<compile_context>
chip_gen: v6e
topology: v6e:2x2x1
jax: 0.10.0
libtpu: 0.0.40
codegen_flags: <defaults>
</compile_context>

<pallas_src>
import functools

import jax
import jax.numpy as jnp
from jax import lax
from jax.experimental import pallas as pl
from jax.experimental.pallas import tpu as pltpu

EPS = 1e-5
_TARGET_TILE_BYTES = 4 << 20      # per-step input-tile goal (HBM-roofline zone)
_DEFAULT_SCOPED_SAFE = 12 << 20   # stay under the default scoped-VMEM limit


def _round_up(v, m):
    return -(-v // m) * m


def _vmem_caps():
    """Return (physical_vmem_bytes, hard_cap_bytes), generation aware."""
    try:
        cap = int(pltpu.get_tpu_info().vmem_capacity_bytes)
        cap = max(32 << 20, min(cap, 256 << 20))
    except Exception:
        cap = 64 << 20            # conservative fallback = v7x (64 MiB / TC)
    hard_cap = (cap * 3) // 4     # never request more than ~75% of physical
    return cap, hard_cap


def _maybe_limit(need_bytes, hard_cap):
    """Only raise vmem_limit_bytes when the default scoped limit is unsafe."""
    if need_bytes <= _DEFAULT_SCOPED_SAFE:
        return None
    return int(min(hard_cap, need_bytes + (2 << 20)))


# ---------------------------------------------------------------------------
# kernels
# ---------------------------------------------------------------------------
def _batchnorm(x, inv_b):
    """BatchNorm1d (training, affine=False) on a (B, f) f32 tile."""
    mean = jnp.sum(x, axis=0, keepdims=True) * inv_b           # mul, not div
    centered = x - mean
    var = jnp.sum(centered * centered, axis=0, keepdims=True) * inv_b
    return centered * lax.rsqrt(var + EPS)                     # EUP rsqrt


def _fused_kernel(x_ref, o_ref, *, batch_normalize, unit_normalize, inv_b):
    """Fast path: whole (B, F) array resident in VMEM, single invocation."""
    x = x_ref[...].astype(jnp.float32)
    if batch_normalize:
        x = _batchnorm(x, inv_b)
    if unit_normalize:
        ssq = jnp.sum(x * x, axis=1, keepdims=True)
        x = x * lax.rsqrt(ssq)            # all-zero row -> NaN (torch parity)
    o_ref[...] = x.astype(o_ref.dtype)


def _bn_tiles_kernel(x_ref, o_ref, *, inv_b):
    """BN only: independent (B, tile_f) feature tiles (edge lanes clipped)."""
    x = x_ref[...].astype(jnp.float32)
    o_ref[...] = _batchnorm(x, inv_b).astype(o_ref.dtype)


def _l2_rows_kernel(x_ref, o_ref):
    """L2 only: independent (tile_b, F) row tiles, single pass."""
    x = x_ref[...].astype(jnp.float32)
    ssq = jnp.sum(x * x, axis=1, keepdims=True)
    o_ref[...] = (x * lax.rsqrt(ssq)).astype(o_ref.dtype)


def _bn_l2_kernel(x_ref, o_ref, ssq_ref, *, inv_b, tile_f, n_features, masked):
    """BN + L2, two passes over feature tiles with the whole batch per block.

    pass 0 (p == 0): BN per tile, accumulate masked row sum-of-squares.
    pass 1 (p == 1): BN again (cheap, hidden under HBM stream) and apply the
                     per-row L2 scale; each output block written exactly once.
    """
    p = pl.program_id(0)          # 0: accumulate, 1: finalize
    j = pl.program_id(1)          # feature tile

    x = x_ref[...].astype(jnp.float32)
    xn = _batchnorm(x, inv_b)

    @pl.when(jnp.logical_and(p == 0, j == 0))
    def _init():
        ssq_ref[...] = jnp.zeros_like(ssq_ref)

    @pl.when(p == 0)
    def _accumulate():
        xs = xn
        if masked:  # zero the padded lanes of the edge tile before the norm
            gcol = j * tile_f + lax.broadcasted_iota(jnp.int32, xn.shape, 1)
            xs = jnp.where(gcol < n_features, xn, 0.0)
        ssq_ref[...] += jnp.sum(xs * xs, axis=1, keepdims=True)

    @pl.when(p == 1)
    def _finalize():
        # all-zero row -> NaN, same as torch.norm divide
        o_ref[...] = (xn * lax.rsqrt(ssq_ref[...])).astype(o_ref.dtype)


# ---------------------------------------------------------------------------
# tile-size heuristics
# ---------------------------------------------------------------------------
def _choose_tile_f(B, F, itemsize, step_budget):
    """Feature-tile width for the whole-batch-column BatchNorm paths."""
    if F <= 128:
        return F                                    # single full-width tile
    Bp = _round_up(B, 8)
    by_budget = step_budget // (Bp * (4 * itemsize + 12))
    by_target = _TARGET_TILE_BYTES // (Bp * itemsize)
    lanes = min(by_budget, max(by_target, 128)) // 128 * 128
    return int(max(128, min(lanes, _round_up(F, 128))))


def _choose_tile_b(B, F, itemsize, step_budget):
    """Row-tile height for the batch-parallel L2-only path."""
    if B <= 8:
        return B
    Fp = _round_up(F, 128)
    by_budget = step_budget // (Fp * (4 * itemsize + 12))
    by_target = _TARGET_TILE_BYTES // (Fp * itemsize)
    rows = min(by_budget, max(by_target, 8)) // 8 * 8
    return int(max(8, min(rows, _round_up(B, 8))))


# ---------------------------------------------------------------------------
# wrapper
# ---------------------------------------------------------------------------
def embedding_forward(x, *, batch_normalize=False, unit_normalize=False,
                      tile_f=None, tile_b=None, force_tiled=False):
    """Pallas implementation of Embedding.forward; x: (batch, n_features)."""
    if not batch_normalize and not unit_normalize:
        return x                       # PyTorch returns the input unchanged

    B, F = x.shape
    itemsize = jnp.dtype(x.dtype).itemsize
    inv_b = 1.0 / B                    # fold the 1/batch divide into a mul
    _, hard_cap = _vmem_caps()
    step_budget = hard_cap - (4 << 20)
    Bp, Fp = _round_up(B, 8), _round_up(F, 128)
    out_shape = jax.ShapeDtypeStruct((B, F), x.dtype)

    # --------- fast path: whole problem resident in VMEM, one pass ----------
    # When both normalizations are requested, staying resident saves a whole
    # second HBM read, so allow the full budget; otherwise cap at 32 MiB and
    # prefer the pipelined tiled paths for large arrays.
    fast_bytes = Bp * Fp * (2 * itemsize + 16) + Bp * 512
    fast_cap = (step_budget if (batch_normalize and unit_normalize)
                else min(step_budget, 32 << 20))
    if not force_tiled and fast_bytes <= fast_cap:
        limit = _maybe_limit(fast_bytes, hard_cap)
        return pl.pallas_call(
            functools.partial(_fused_kernel, batch_normalize=batch_normalize,
                              unit_normalize=unit_normalize, inv_b=inv_b),
            out_shape=out_shape,
            compiler_params=(pltpu.CompilerParams(vmem_limit_bytes=limit)
                             if limit is not None else None),
            cost_estimate=pl.CostEstimate(
                flops=int(8 * B * F), transcendentals=int(B + F),
                bytes_accessed=int(2 * B * F * itemsize)),
        )(x)

    # ------- L2 only: rows independent -> batch-parallel single pass --------
    if unit_normalize and not batch_normalize:
        if tile_b is None:
            tile_b = _choose_tile_b(B, F, itemsize, step_budget)
        step_bytes = _round_up(tile_b, 8) * Fp * (4 * itemsize + 12)
        return pl.pallas_call(
            _l2_rows_kernel,
            out_shape=out_shape,
            grid_spec=pltpu.PrefetchScalarGridSpec(
                num_scalar_prefetch=0,
                grid=(pl.cdiv(B, tile_b),),
                in_specs=[pl.BlockSpec((tile_b, F), lambda i: (i, 0))],
                out_specs=pl.BlockSpec((tile_b, F), lambda i: (i, 0)),
            ),
            compiler_params=pltpu.CompilerParams(
                dimension_semantics=("parallel",),
                vmem_limit_bytes=_maybe_limit(step_bytes, hard_cap)),
            cost_estimate=pl.CostEstimate(
                flops=int(3 * B * F), transcendentals=int(B),
                bytes_accessed=int(2 * B * F * itemsize)),
        )(x)

    # -------- BatchNorm paths: whole batch per block, feature tiles ---------
    if tile_f is None:
        tile_f = _choose_tile_f(B, F, itemsize, step_budget)
    n_tiles = pl.cdiv(F, tile_f)

    if not unit_normalize:            # BN only: one independent pass per tile
        step_bytes = Bp * tile_f * (4 * itemsize + 12)
        return pl.pallas_call(
            functools.partial(_bn_tiles_kernel, inv_b=inv_b),
            out_shape=out_shape,
            grid_spec=pltpu.PrefetchScalarGridSpec(
                num_scalar_prefetch=0,
                grid=(n_tiles,),
                in_specs=[pl.BlockSpec((B, tile_f), lambda j: (0, j))],
                out_specs=pl.BlockSpec((B, tile_f), lambda j: (0, j)),
            ),
            compiler_params=pltpu.CompilerParams(
                dimension_semantics=("parallel",),
                vmem_limit_bytes=_maybe_limit(step_bytes, hard_cap)),
            cost_estimate=pl.CostEstimate(
                flops=int(5 * B * F), transcendentals=int(F),
                bytes_accessed=int(2 * B * F * itemsize)),
        )(x)

    # BN + L2: two-pass grid over feature tiles with a shared row-ssq scratch.
    step_bytes = Bp * tile_f * (4 * itemsize + 12) + Bp * 512
    masked = (F % tile_f) != 0
    return pl.pallas_call(
        functools.partial(_bn_l2_kernel, inv_b=inv_b, tile_f=tile_f,
                          n_features=F, masked=masked),
        out_shape=out_shape,
        grid_spec=pltpu.PrefetchScalarGridSpec(
            num_scalar_prefetch=0,
            grid=(2, n_tiles),
            in_specs=[pl.BlockSpec((B, tile_f), lambda p, j: (0, j))],
            # Pass 0 parks the output on block (0, 0), which the kernel never
            # writes during pass 0; pass 1 visits and writes every block.  The
            # last data flushed to HBM for each block is therefore its pass-1
            # write, so the result is correct whether Pallas flushes only on
            # block-index change or after every grid step.
            out_specs=pl.BlockSpec((B, tile_f), lambda p, j: (0, j * p)),
            scratch_shapes=[pltpu.VMEM((B, 1), jnp.float32)],
        ),
        compiler_params=pltpu.CompilerParams(
            dimension_semantics=("arbitrary", "arbitrary"),
            vmem_limit_bytes=_maybe_limit(step_bytes, hard_cap)),
        cost_estimate=pl.CostEstimate(
            flops=int(8 * B * F), transcendentals=int(B + F),
            bytes_accessed=int(3 * B * F * itemsize)),
    )(x)


# ---------------------------------------------------------------------------
# reference + self-test
# ---------------------------------------------------------------------------
def _reference(x, *, batch_normalize, unit_normalize):
    x = x.astype(jnp.float32)
    if batch_normalize:
        mean = jnp.mean(x, axis=0, keepdims=True)
        var = jnp.mean((x - mean) ** 2, axis=0, keepdims=True)
        x = (x - mean) / jnp.sqrt(var + EPS)
    if unit_normalize:
        x = x / jnp.linalg.norm(x, axis=1, keepdims=True)
    return x


if __name__ == "__main__":
    key = jax.random.PRNGKey(0)
    batch, n_features = 16, 192       # pyannote-style embedding width
    x = jax.random.normal(key, (batch, n_features), dtype=jnp.float32)

    flag_cases = [
        dict(batch_normalize=True, unit_normalize=True),
        dict(batch_normalize=True, unit_normalize=False),
        dict(batch_normalize=False, unit_normalize=True),
        dict(batch_normalize=False, unit_normalize=False),
    ]

    # Fast (whole-problem-in-VMEM, single pass) path.
    for flags in flag_cases:
        out = jax.block_until_ready(embedding_forward(x, **flags))
        ref = _reference(x, **flags)
        assert out.shape == (batch, n_features), flags
        assert jnp.allclose(out, ref, atol=2e-5, rtol=2e-5), flags

    # Tiled paths (forced): multi-tile feature axis + edge-lane masking for
    # the BatchNorm paths, batch-parallel row tiles for the L2-only path.
    tiled_cases = [
        dict(batch_normalize=True, unit_normalize=True, tile_f=128),
        dict(batch_normalize=True, unit_normalize=False, tile_f=128),
        dict(batch_normalize=False, unit_normalize=True, tile_b=8),
    ]
    for case in tiled_cases:
        flags = {k: case[k] for k in ("batch_normalize", "unit_normalize")}
        out = jax.block_until_ready(
            embedding_forward(x, force_tiled=True, **case))
        ref = _reference(x, **flags)
        assert out.shape == (batch, n_features), case
        assert jnp.allclose(out, ref, atol=2e-5, rtol=2e-5), case

    print("KERNEL_OK")
</pallas_src>

<mosaic_0001>
module attributes {stable_mosaic.version = 11 : i64} {
  func.func @_fused_kernel(%arg0: memref<16x192xf32, #tpu.memory_space<vmem>>, %arg1: memref<16x192xf32, #tpu.memory_space<vmem>>) attributes {dimension_semantics = [], scalar_prefetch = 0 : i64, scratch_operands = 0 : i64, tpu.core_type = #tpu.core_type<tc>} {
    %c0 = arith.constant 0 : index
    %c0_0 = arith.constant 0 : index
    %0 = vector.load %arg0[%c0, %c0_0] : memref<16x192xf32, #tpu.memory_space<vmem>>, vector<16x192xf32>
    %cst = arith.constant dense<0.000000e+00> : vector<192xf32>
    %1 = vector.multi_reduction <add>, %0, %cst [0] : vector<16x192xf32> to vector<192xf32>
    %2 = vector.shape_cast %1 : vector<192xf32> to vector<1x192xf32>
    %cst_1 = arith.constant 6.250000e-02 : f32
    %3 = vector.broadcast %cst_1 : f32 to vector<1x192xf32>
    %4 = arith.mulf %2, %3 : vector<1x192xf32>
    %5 = vector.broadcast %4 : vector<1x192xf32> to vector<16x192xf32>
    %6 = arith.subf %0, %5 : vector<16x192xf32>
    %7 = arith.mulf %6, %6 : vector<16x192xf32>
    %cst_2 = arith.constant dense<0.000000e+00> : vector<192xf32>
    %8 = vector.multi_reduction <add>, %7, %cst_2 [0] : vector<16x192xf32> to vector<192xf32>
    %9 = vector.shape_cast %8 : vector<192xf32> to vector<1x192xf32>
    %cst_3 = arith.constant 6.250000e-02 : f32
    %10 = vector.broadcast %cst_3 : f32 to vector<1x192xf32>
    %11 = arith.mulf %9, %10 : vector<1x192xf32>
    %cst_4 = arith.constant 9.99999974E-6 : f32
    %12 = vector.broadcast %cst_4 : f32 to vector<1x192xf32>
    %13 = arith.addf %11, %12 : vector<1x192xf32>
    %14 = math.rsqrt %13 : vector<1x192xf32>
    %15 = vector.broadcast %14 : vector<1x192xf32> to vector<16x192xf32>
    %16 = arith.mulf %6, %15 : vector<16x192xf32>
    %17 = arith.mulf %16, %16 : vector<16x192xf32>
    %cst_5 = arith.constant dense<0.000000e+00> : vector<16xf32>
    %18 = vector.multi_reduction <add>, %17, %cst_5 [1] : vector<16x192xf32> to vector<16xf32>
    %19 = vector.shape_cast %18 : vector<16xf32> to vector<16x1xf32>
    %20 = math.rsqrt %19 : vector<16x1xf32>
    %21 = vector.broadcast %20 : vector<16x1xf32> to vector<16x192xf32>
    %22 = arith.mulf %16, %21 : vector<16x192xf32>
    %c0_6 = arith.constant 0 : index
    %c0_7 = arith.constant 0 : index
    %23 = vector.load %arg1[%c0_6, %c0_7] : memref<16x192xf32, #tpu.memory_space<vmem>>, vector<16x192xf32>
    tpu.vector_store %arg1[%c0_6, %c0_7], %22 {strides = array<i32>} : memref<16x192xf32, #tpu.memory_space<vmem>>, vector<16x192xf32>,
    return
  }
}

</mosaic_0001>

<bundles_post_ra>
// kernel: tpu_custom_call.1
= control target key start
LH: loop header
LB: loop body
LE: loop exit
PB: predicated region body
PF: predicated region fallthrough
CT: control target
= control target key end

     0   :  { %6 = vsyncpa [#allocation3], 0  ;;  %s209_s0 = inlined_call_operand.hbm [shape: f32[16,192], index: 0, kind: input, shape index: {}]   ;;  %s210_s1 = inlined_call_operand.hbm [shape: f32[16,192], index: 1, kind: output, shape index: {}]  }
   0x1   :  { %7 = vsyncpa [#allocation4], 0  ;;  %s175_s6 = smov [#allocation2]  }
   0x2   :  { %s13_s7 = sshll.u32 %s175_s6, 4  ;;  %s14_s7 = int_to_ptr.vmem [resolvable:$true] %s13_s7 }
   0x3   :  { %s139_s8 = scalar_lea.vmem %s14_s7, 512  ;;  %p144_p1 = scmp.lt.s32.totalorder %s14_s7, %s14_s7 }
   0x4   :  { %p140_p0 = scmp.ne.s32.totalorder %s14_s7, %s139_s8  ;;  %p145_p2 = scmp.lt.s32.totalorder %s139_s8, %s139_s8 }
   0x6   :  { %p146_p3 = por %p145_p2, %p144_p1 }
   0x8   :  { %p147_p4 = pnand %p146_p3, %p140_p0 }
   0xa   :  { %150 = shalt.err (!%p147_p4)
}
   0xb   :  { %s176_s9 = smov 256   ;;  %s177_s10 = smov 16  }
   0xc   :  { %19 = dma.hbm_to_vmem [thread:$0]  %s209_s0, 512, %s14_s7, [#allocation3], %s176_s9, %s176_s9, %s177_s10  }
   0xd   :  { %171 = dma.done.wait [#allocation3], 512  }
   0xe   :  { %172 = vsyncadd [#allocation3], 4294966784  ;;  %vm34_vm0 = vcmask 523264   ;;  %v23_v0 = vld [vmem:[#allocation2] sm:$0xff]  ;;  %v24_v1 = vld [vmem:[#allocation2 + $0x8] sm:$0xff]  ;;  %s178_s0 = smov [#allocation5]  }
   0xf   :  { %v25_v2 = vld [vmem:[#allocation2 + $0x10] sm:$0xff]  ;;  %v26_v3 = vld [vmem:[#allocation2 + $0x18] sm:$0xff]  ;;  %v35_v5 = vsel %vm34_vm0, %v24_v1, 0.0  ;;  %s107_s13 = sshll.u32 %s178_s0, 4  ;;  %s108_s13 = int_to_ptr.vmem [resolvable:$true] %s107_s13 }
  0x10   :  { %v27_v4 = vadd.f32 %v25_v2, %v23_v0  ;;  %v36_v6 = vsel %vm34_vm0, %v26_v3, 0.0  ;;  %s151_s14 = scalar_lea.vmem %s108_s13, 512  ;;  %p156_p6 = scmp.lt.s32.totalorder %s108_s13, %s108_s13 }
  0x11   :  { %v37_v8 = vadd.f32 %v36_v6, %v35_v5  ;;  %p152_p5 = scmp.ne.s32.totalorder %s108_s13, %s151_s14  ;;  %p157_p7 = scmp.lt.s32.totalorder %s151_s14, %s151_s14 }
  0x12   :  { %v28_v7 = vrot.slane %v27_v4, 4 }
  0x13   :  { %v38_v10 = vrot.slane %v37_v8, 4  ;;  %p158_p8 = por %p157_p7, %p156_p6 }
  0x14   :  { %v29_v9 = vadd.f32 %v28_v7, %v27_v4 }
  0x15   :  { %v39_v12 = vadd.f32 %v38_v10, %v37_v8  ;;  %p159_p9 = pnand %p158_p8, %p152_p5 }
  0x16   :  { %v30_v11 = vrot.slane %v29_v9, 2 }
  0x17   :  { %v40_v14 = vrot.slane %v39_v12, 2 }
  0x18   :  { %v31_v13 = vadd.f32 %v30_v11, %v29_v9 }
  0x19   :  { %v41_v16 = vadd.f32 %v40_v14, %v39_v12 }
  0x1a   :  { %v32_v15 = vrot.slane %v31_v13, 1 }
  0x1b   :  { %v42_v18 = vrot.slane %v41_v16, 1 }
  0x1c   :  { %v33_v17 = vadd.f32 %v32_v15, %v31_v13 }
  0x1d   :  { %v43_v19 = vadd.f32 %v42_v18, %v41_v16 }
  0x1e   :  { %v44_v20 = vmul.f32 0.0625, %v33_v17 }
  0x1f   :  { %v45_v21 = vmul.f32 0.0625, %v43_v19 }
  0x20   :  { %v46_v22 = vsub.f32 %v23_v0, %v44_v20  ;;  %v48_v23 = vsub.f32 %v25_v2, %v44_v20 }
  0x21   :  { %v47_v24 = vsub.f32 %v24_v1, %v45_v21  ;;  %v49_v25 = vsub.f32 %v26_v3, %v45_v21 }
  0x22   :  { %v50_v26 = vmul.f32 %v46_v22, %v46_v22  ;;  %v52_v27 = vmul.f32 %v48_v23, %v48_v23 }
  0x23   :  { %v51_v28 = vmul.f32 %v47_v24, %v47_v24  ;;  %v53_v29 = vmul.f32 %v49_v25, %v49_v25 }
  0x24   :  { %v54_v30 = vadd.f32 %v52_v27, %v50_v26 }
  0x25   :  { %v61_v32 = vsel %vm34_vm0, %v51_v28, 0.0  ;;  %v62_v33 = vsel %vm34_vm0, %v53_v29, 0.0 }
  0x26   :  { %v55_v31 = vrot.slane %v54_v30, 4  ;;  %v63_v34 = vadd.f32 %v62_v33, %v61_v32 }
  0x28   :  { %v56_v35 = vadd.f32 %v55_v31, %v54_v30  ;;  %v64_v36 = vrot.slane %v63_v34, 4 }
  0x2a   :  { %v57_v37 = vrot.slane %v56_v35, 2  ;;  %v65_v38 = vadd.f32 %v64_v36, %v63_v34 }
  0x2c   :  { %v58_v39 = vadd.f32 %v57_v37, %v56_v35  ;;  %v66_v40 = vrot.slane %v65_v38, 2 }
  0x2e   :  { %v59_v41 = vrot.slane %v58_v39, 1  ;;  %v67_v42 = vadd.f32 %v66_v40, %v65_v38 }
  0x30   :  { %v60_v43 = vadd.f32 %v59_v41, %v58_v39  ;;  %v68_v44 = vrot.slane %v67_v42, 1 }
  0x32   :  { %v70_v45 = vmul.f32 0.0625, %v60_v43  ;;  %v69_v46 = vadd.f32 %v68_v44, %v67_v42 }
  0x34   :  { %v72_v47 = vadd.f32 1e-05, %v70_v45  ;;  %v71_v48 = vmul.f32 0.0625, %v69_v46 }
  0x36   :  { %123 = vrsqrt.f32 %v72_v47  ;;  %v73_v49 = vadd.f32 1e-05, %v71_v48 }
  0x38   :  { %125 = vrsqrt.f32 %v73_v49 }
  0x43   :  { %v124_v50 = vpop.eup %123 }
  0x44   :  { %v76_v51 = vmul.f32 %v124_v50, %v46_v22  ;;  %v78_v53 = vmul.f32 %v124_v50, %v48_v23 }
  0x45   :  { %v126_v52 = vpop.eup %125 }
  0x46   :  { %v77_v54 = vmul.f32 %v126_v52, %v47_v24  ;;  %v79_v55 = vmul.f32 %v126_v52, %v49_v25  ;;  %v80_v56 = vmul.f32 %v76_v51, %v76_v51  ;;  %v82_v59 = vmul.f32 %v78_v53, %v78_v53 }
  0x48   :  { %v81_v57 = vmul.f32 %v77_v54, %v77_v54  ;;  %v83_v58 = vmul.f32 %v79_v55, %v79_v55 }
  0x4a   :  { %v84_v60 = vsel %vm34_vm0, %v81_v57, 0.0  ;;  %v88_v61 = vsel %vm34_vm0, %v83_v58, 0.0 }
  0x4b   :  { %v85_v62 = vadd.f32 %v84_v60, %v80_v56  ;;  %v89_v63 = vadd.f32 %v88_v61, %v82_v59 }
  0x4d   :  { %86 = vadd.xlane.f32.xlu0 %v85_v62 }
  0x51   :  { %90 = vadd.xlane.f32.xlu0 %v89_v63 }
  0xd6   :  { %v87_v0 = vpop.xlane.xlu0 %86 }
  0xd7   :  { %127 = vrsqrt.f32 %v87_v0 }
  0xda   :  { %v91_v1 = vpop.xlane.xlu0 %90 }
  0xdb   :  { %129 = vrsqrt.f32 %v91_v1 }
  0xe4   :  { %v128_v2 = vpop.eup %127 }
  0xe5   :  { %v94_v3 = vmul.f32 %v128_v2, %v76_v51  ;;  %v95_v4 = vmul.f32 %v128_v2, %v77_v54 }
  0xe7   :  { %98 = vst [vmem:[#allocation5] sm:$0xff] %v94_v3  ;;  %99 = vst.msk [vmem:[#allocation5 + $0x8] sm:$0xff] %vm34_vm0, %v95_v4 }
  0xe8   :  { %v130_v5 = vpop.eup %129 }
  0xe9   :  { %v96_v6 = vmul.f32 %v130_v5, %v78_v53  ;;  %v97_v7 = vmul.f32 %v130_v5, %v79_v55 }
  0xeb   :  { %100 = vst [vmem:[#allocation5 + $0x10] sm:$0xff] %v96_v6  ;;  %101 = vst.msk [vmem:[#allocation5 + $0x18] sm:$0xff] %vm34_vm0, %v97_v7 }
  0xec   :  { %162 = shalt.err (!%p159_p9)
}
  0xed   :  { %113 = dma.vmem_to_hbm [thread:$0]  %s108_s13, 512, %s210_s1, [#allocation4], %s176_s9, %s176_s9, %s177_s10  }
  0xee   :  { %173 = dma.done.wait [#allocation4], 512  }
  0xef   :  { %174 = vsyncadd [#allocation4], 4294966784 }
  0xf0   :  { %117 = vsyncpa [#allocation3], 1 }
  0xf1   :  { %118 = vsyncpa [#allocation4], 1 }

</bundles_post_ra>
